<compile_context>
chip_gen: v7x
topology: tpu7x:2x2x1
jax: 0.10.0
libtpu: 0.0.40
codegen_flags: <defaults>
</compile_context>

<pallas_src>
import functools

import jax
import jax.numpy as jnp
from jax import lax
from jax.experimental import pallas as pl
from jax.experimental.pallas import tpu as pltpu


def _wave_block_kernel(x_ref, w23_ref, b23_ref, w4_ref, b4_ref, o_ref, xpad_ref,
                       *, Nb, L, C, K, D, PAD, LEFT):
    # x_ref:    (Nb, C, L)              input block, NCL, f32
    # w23_ref:  (K, 2C, C)              fused conv2/conv3 weights (mxu dtype)
    # b23_ref:  (2C, 1)                 fused conv2/conv3 bias, f32
    # w4_ref:   (C, C)                  1x1 conv weight (mxu dtype)
    # b4_ref:   (C, 1)                  1x1 conv bias, f32
    # o_ref:    (Nb, C, L)              output block, NCL
    # xpad_ref: (Nb, C, LEFT + L + PAD) VMEM scratch holding the zero-padded input
    W = LEFT + L + PAD

    # Build the zero halo in VMEM (cheap; avoids a wrapper-side padded copy through HBM).
    # The interior is stored at the lane-aligned offset LEFT; only the per-tap loads below
    # use unaligned lane offsets.
    xpad_ref[...] = jnp.zeros((Nb, C, W), xpad_ref.dtype)
    xpad_ref[:, :, LEFT:LEFT + L] = x_ref[...].astype(xpad_ref.dtype)

    bias23 = jnp.broadcast_to(b23_ref[...], (2 * C, L))   # hoisted out of the loops (f32)
    w4 = w4_ref[...]                                      # (C, C)
    b4 = b4_ref[...]                                      # (C, 1)

    for b in range(Nb):                                   # static unroll over the batch block
        # Fused dilated conv2+conv3: per-tap shifted-window matmul on the MXU,
        # bias pre-loaded into the accumulator.
        acc = bias23                                       # (2C, L) f32
        for t in range(K):
            start = LEFT - PAD + t * D                     # static lane offset
            xt = xpad_ref[b, :, start:start + L]           # (C, L) shifted window (ref slice)
            acc = acc + jnp.dot(w23_ref[t], xt, preferred_element_type=jnp.float32)

        # Gated activation: rows [0, C) are conv2 (tanh), rows [C, 2C) are conv3 (sigmoid).
        gated = jnp.tanh(acc[:C, :]) * jax.nn.sigmoid(acc[C:, :])   # (C, L), f32

        # 1x1 conv (conv4) + bias + residual (residual read straight from the f32 input).
        y = jnp.dot(w4, gated.astype(w4.dtype), preferred_element_type=jnp.float32)
        o_ref[b] = (x_ref[b] + y + b4).astype(o_ref.dtype)


def wave_block_pallas(x_ncl, params, *, kernel_size, dilation,
                      batch_block=1, mxu_dtype=jnp.float32):
    """x_ncl: (N, C, L) float32 — same layout as the PyTorch Conv1d input."""
    N, C, L = x_ncl.shape
    K, D = kernel_size, dilation
    pad = int((K + (K - 1) * (D - 1)) / 2)   # identical formula to the PyTorch module

    # Correctness guards (the PyTorch module itself only works under these conditions).
    assert (K - 1) * D % 2 == 0, \
        "conv output length != input length; the PyTorch residual add would fail too"
    assert params["w2"].shape == (C, C, K) and params["w3"].shape == (C, C, K), \
        "wave_block forward requires in_ch == out_ch"
    assert params["w4"].shape == (C, C, 1)
    assert N % batch_block == 0
    Nb = batch_block
    left = 0 if pad == 0 else ((pad + 127) // 128) * 128   # lane-aligned left halo

    # Fuse conv2 & conv3: per-tap (2C, C) weight and a single (2C, 1) bias.
    # PyTorch Conv1d weight layout is (out_ch, in_ch, k).
    w23 = jnp.concatenate([params["w2"], params["w3"]], axis=0)           # (2C, C, K)
    w23 = jnp.transpose(w23, (2, 0, 1)).astype(mxu_dtype)                 # (K, 2C, C)
    b23 = jnp.concatenate([params["b2"], params["b3"]]).reshape(2 * C, 1).astype(jnp.float32)
    w4 = params["w4"][:, :, 0].astype(mxu_dtype)                          # (C, C)
    b4 = params["b4"].reshape(C, 1).astype(jnp.float32)

    kernel = functools.partial(_wave_block_kernel, Nb=Nb, L=L, C=C, K=K, D=D,
                               PAD=pad, LEFT=left)

    return pl.pallas_call(
        kernel,
        out_shape=jax.ShapeDtypeStruct((N, C, L), x_ncl.dtype),
        grid_spec=pltpu.PrefetchScalarGridSpec(
            num_scalar_prefetch=0,
            grid=(N // Nb,),
            in_specs=[
                pl.BlockSpec((Nb, C, L), lambda b: (b, 0, 0)),       # x (NCL, unpadded)
                pl.BlockSpec((K, 2 * C, C), lambda b: (0, 0, 0)),    # fused conv2/3 weights
                pl.BlockSpec((2 * C, 1), lambda b: (0, 0)),          # fused conv2/3 bias
                pl.BlockSpec((C, C), lambda b: (0, 0)),              # conv4 (1x1) weight
                pl.BlockSpec((C, 1), lambda b: (0, 0)),              # conv4 bias
            ],
            out_specs=pl.BlockSpec((Nb, C, L), lambda b: (b, 0, 0)),
            scratch_shapes=[pltpu.VMEM((Nb, C, left + L + pad), mxu_dtype)],
        ),
        compiler_params=pltpu.CompilerParams(dimension_semantics=("parallel",)),
    )(x_ncl, w23, b23, w4, b4)


def wave_block_reference(x_ncl, params, *, kernel_size, dilation):
    """Pure-JAX reference using lax.conv_general_dilated (matches PyTorch Conv1d)."""
    K, D = kernel_size, dilation
    pad = int((K + (K - 1) * (D - 1)) / 2)
    dn = ("NCH", "OIH", "NCH")

    def conv(x, w, b, dil, p):
        y = lax.conv_general_dilated(x, w, window_strides=(1,), padding=[(p, p)],
                                     rhs_dilation=(dil,), dimension_numbers=dn)
        return y + b[None, :, None]

    t = jnp.tanh(conv(x_ncl, params["w2"], params["b2"], D, pad))
    s = jax.nn.sigmoid(conv(x_ncl, params["w3"], params["b3"], D, pad))
    res = t * s
    y = conv(res, params["w4"], params["b4"], 1, 0)
    return x_ncl + y


if __name__ == "__main__":
    N, C, L = 2, 16, 64          # batch, channels (in_ch == out_ch), sequence length
    K, D = 3, 2                  # kernel_size, dilation

    key = jax.random.PRNGKey(0)
    ks = jax.random.split(key, 8)
    scale = 0.1
    params = {
        "w2": scale * jax.random.normal(ks[0], (C, C, K), jnp.float32),
        "b2": scale * jax.random.normal(ks[1], (C,), jnp.float32),
        "w3": scale * jax.random.normal(ks[2], (C, C, K), jnp.float32),
        "b3": scale * jax.random.normal(ks[3], (C,), jnp.float32),
        "w4": scale * jax.random.normal(ks[4], (C, C, 1), jnp.float32),
        "b4": scale * jax.random.normal(ks[5], (C,), jnp.float32),
    }
    x = jax.random.normal(ks[6], (N, C, L), jnp.float32)

    ref = jax.block_until_ready(wave_block_reference(x, params, kernel_size=K, dilation=D))

    # f32 MXU path (tight correctness check).
    out = jax.block_until_ready(wave_block_pallas(x, params, kernel_size=K, dilation=D))
    assert out.shape == (N, C, L)
    assert jnp.allclose(out, ref, rtol=1e-5, atol=1e-5), float(jnp.max(jnp.abs(out - ref)))

    # bf16 MXU-input path (fast path on v6e/v7x); accumulation, activations and the
    # residual stay in f32, so only a small quantization error vs. the f32 reference.
    out_bf16 = jax.block_until_ready(
        wave_block_pallas(x, params, kernel_size=K, dilation=D, mxu_dtype=jnp.bfloat16))
    assert jnp.allclose(out_bf16, ref, rtol=5e-2, atol=5e-2), \
        float(jnp.max(jnp.abs(out_bf16 - ref)))

    print("KERNEL_OK")
</pallas_src>

<mosaic_0001>
module attributes {stable_mosaic.version = 11 : i64} {
  func.func @_wave_block_kernel(%arg0: i32, %arg1: memref<1x16x64xf32, #tpu.memory_space<vmem>>, %arg2: memref<3x32x16xf32, #tpu.memory_space<vmem>>, %arg3: memref<32x1xf32, #tpu.memory_space<vmem>>, %arg4: memref<16x16xf32, #tpu.memory_space<vmem>>, %arg5: memref<16x1xf32, #tpu.memory_space<vmem>>, %arg6: memref<1x16x64xf32, #tpu.memory_space<vmem>>, %arg7: memref<1x16x194xf32, #tpu.memory_space<vmem>>) attributes {dimension_semantics = [#tpu.dimension_semantics<parallel>], iteration_bounds = array<i64: 2>, scalar_prefetch = 0 : i64, scratch_operands = 1 : i64, tpu.core_type = #tpu.core_type<tc>, window_params = [{transform_indices = @transform_0, window_bounds = array<i64: 1, 16, 64>}, {pipeline_mode = #tpu.pipeline_mode<synchronous>, transform_indices = @transform_1, window_bounds = array<i64: 3, 32, 16>}, {pipeline_mode = #tpu.pipeline_mode<synchronous>, transform_indices = @transform_2, window_bounds = array<i64: 32, 1>}, {pipeline_mode = #tpu.pipeline_mode<synchronous>, transform_indices = @transform_3, window_bounds = array<i64: 16, 16>}, {pipeline_mode = #tpu.pipeline_mode<synchronous>, transform_indices = @transform_4, window_bounds = array<i64: 16, 1>}, {transform_indices = @transform_5, window_bounds = array<i64: 1, 16, 64>}]} {
    %cst = arith.constant 0.000000e+00 : f32
    %0 = vector.broadcast %cst : f32 to vector<1x16x194xf32>
    %c0 = arith.constant 0 : index
    %c0_0 = arith.constant 0 : index
    %c0_1 = arith.constant 0 : index
    %1 = vector.load %arg7[%c0, %c0_0, %c0_1] : memref<1x16x194xf32, #tpu.memory_space<vmem>>, vector<1x16x194xf32>
    tpu.vector_store %arg7[%c0, %c0_0, %c0_1], %0 {strides = array<i32>} : memref<1x16x194xf32, #tpu.memory_space<vmem>>, vector<1x16x194xf32>,
    %c0_2 = arith.constant 0 : index
    %c0_3 = arith.constant 0 : index
    %c0_4 = arith.constant 0 : index
    %2 = vector.load %arg1[%c0_2, %c0_3, %c0_4] : memref<1x16x64xf32, #tpu.memory_space<vmem>>, vector<1x16x64xf32>
    %c0_5 = arith.constant 0 : index
    %c0_6 = arith.constant 0 : index
    %c128 = arith.constant 128 : index
    %3 = vector.load %arg7[%c0_5, %c0_6, %c128] : memref<1x16x194xf32, #tpu.memory_space<vmem>>, vector<1x16x64xf32>
    tpu.vector_store %arg7[%c0_5, %c0_6, %c128], %2 {strides = array<i32>} : memref<1x16x194xf32, #tpu.memory_space<vmem>>, vector<1x16x64xf32>,
    %c0_7 = arith.constant 0 : index
    %c0_8 = arith.constant 0 : index
    %4 = vector.load %arg3[%c0_7, %c0_8] : memref<32x1xf32, #tpu.memory_space<vmem>>, vector<32x1xf32>
    %5 = vector.shape_cast %4 : vector<32x1xf32> to vector<32x1xf32>
    %6 = vector.broadcast %5 : vector<32x1xf32> to vector<32x64xf32>
    %c0_9 = arith.constant 0 : index
    %c0_10 = arith.constant 0 : index
    %7 = vector.load %arg4[%c0_9, %c0_10] : memref<16x16xf32, #tpu.memory_space<vmem>>, vector<16x16xf32>
    %c0_11 = arith.constant 0 : index
    %c0_12 = arith.constant 0 : index
    %8 = vector.load %arg5[%c0_11, %c0_12] : memref<16x1xf32, #tpu.memory_space<vmem>>, vector<16x1xf32>
    %c0_13 = arith.constant 0 : index
    %c0_14 = arith.constant 0 : index
    %c126 = arith.constant 126 : index
    %9 = vector.load %arg7[%c0_13, %c0_14, %c126] : memref<1x16x194xf32, #tpu.memory_space<vmem>>, vector<1x16x64xf32>
    %10 = vector.shape_cast %9 : vector<1x16x64xf32> to vector<16x64xf32>
    %c0_15 = arith.constant 0 : index
    %c0_16 = arith.constant 0 : index
    %c0_17 = arith.constant 0 : index
    %11 = vector.load %arg2[%c0_15, %c0_16, %c0_17] : memref<3x32x16xf32, #tpu.memory_space<vmem>>, vector<1x32x16xf32>
    %12 = vector.shape_cast %11 : vector<1x32x16xf32> to vector<32x16xf32>
    %cst_18 = arith.constant dense<0.000000e+00> : vector<32x64xf32>
    %13 = tpu.matmul %12, %10, %cst_18 {dimension_numbers = #tpu.dot_dimension_numbers<[1], [0], [0], [1], [0, 0, 1, 1], [], []>} : vector<32x16xf32>, vector<16x64xf32>, vector<32x64xf32> -> vector<32x64xf32>
    %14 = arith.addf %6, %13 : vector<32x64xf32>
    %c0_19 = arith.constant 0 : index
    %c0_20 = arith.constant 0 : index
    %c128_21 = arith.constant 128 : index
    %15 = vector.load %arg7[%c0_19, %c0_20, %c128_21] : memref<1x16x194xf32, #tpu.memory_space<vmem>>, vector<1x16x64xf32>
    %16 = vector.shape_cast %15 : vector<1x16x64xf32> to vector<16x64xf32>
    %c1 = arith.constant 1 : index
    %c0_22 = arith.constant 0 : index
    %c0_23 = arith.constant 0 : index
    %17 = vector.load %arg2[%c1, %c0_22, %c0_23] : memref<3x32x16xf32, #tpu.memory_space<vmem>>, vector<1x32x16xf32>
    %18 = vector.shape_cast %17 : vector<1x32x16xf32> to vector<32x16xf32>
    %cst_24 = arith.constant dense<0.000000e+00> : vector<32x64xf32>
    %19 = tpu.matmul %18, %16, %cst_24 {dimension_numbers = #tpu.dot_dimension_numbers<[1], [0], [0], [1], [0, 0, 1, 1], [], []>} : vector<32x16xf32>, vector<16x64xf32>, vector<32x64xf32> -> vector<32x64xf32>
    %20 = arith.addf %14, %19 : vector<32x64xf32>
    %c0_25 = arith.constant 0 : index
    %c0_26 = arith.constant 0 : index
    %c130 = arith.constant 130 : index
    %21 = vector.load %arg7[%c0_25, %c0_26, %c130] : memref<1x16x194xf32, #tpu.memory_space<vmem>>, vector<1x16x64xf32>
    %22 = vector.shape_cast %21 : vector<1x16x64xf32> to vector<16x64xf32>
    %c2 = arith.constant 2 : index
    %c0_27 = arith.constant 0 : index
    %c0_28 = arith.constant 0 : index
    %23 = vector.load %arg2[%c2, %c0_27, %c0_28] : memref<3x32x16xf32, #tpu.memory_space<vmem>>, vector<1x32x16xf32>
    %24 = vector.shape_cast %23 : vector<1x32x16xf32> to vector<32x16xf32>
    %cst_29 = arith.constant dense<0.000000e+00> : vector<32x64xf32>
    %25 = tpu.matmul %24, %22, %cst_29 {dimension_numbers = #tpu.dot_dimension_numbers<[1], [0], [0], [1], [0, 0, 1, 1], [], []>} : vector<32x16xf32>, vector<16x64xf32>, vector<32x64xf32> -> vector<32x64xf32>
    %26 = arith.addf %20, %25 : vector<32x64xf32>
    %27 = vector.extract_strided_slice %26 {offsets = [0, 0], sizes = [16, 64], strides = [1, 1]} : vector<32x64xf32> to vector<16x64xf32>
    %28 = math.tanh %27 : vector<16x64xf32>
    %29 = vector.extract_strided_slice %26 {offsets = [16, 0], sizes = [16, 64], strides = [1, 1]} : vector<32x64xf32> to vector<16x64xf32>
    %30 = arith.negf %29 : vector<16x64xf32>
    %31 = math.exp %30 : vector<16x64xf32>
    %cst_30 = arith.constant 1.000000e+00 : f32
    %32 = vector.broadcast %cst_30 : f32 to vector<16x64xf32>
    %33 = arith.addf %32, %31 : vector<16x64xf32>
    %34 = arith.divf %32, %33 : vector<16x64xf32>
    %35 = arith.mulf %28, %34 : vector<16x64xf32>
    %cst_31 = arith.constant dense<0.000000e+00> : vector<16x64xf32>
    %36 = tpu.matmul %7, %35, %cst_31 {dimension_numbers = #tpu.dot_dimension_numbers<[1], [0], [0], [1], [0, 0, 1, 1], [], []>} : vector<16x16xf32>, vector<16x64xf32>, vector<16x64xf32> -> vector<16x64xf32>
    %c0_32 = arith.constant 0 : index
    %c0_33 = arith.constant 0 : index
    %c0_34 = arith.constant 0 : index
    %37 = vector.load %arg1[%c0_32, %c0_33, %c0_34] : memref<1x16x64xf32, #tpu.memory_space<vmem>>, vector<1x16x64xf32>
    %38 = vector.shape_cast %37 : vector<1x16x64xf32> to vector<16x64xf32>
    %39 = arith.addf %38, %36 : vector<16x64xf32>
    %40 = vector.broadcast %8 : vector<16x1xf32> to vector<16x64xf32>
    %41 = arith.addf %39, %40 : vector<16x64xf32>
    %c0_35 = arith.constant 0 : index
    %c0_36 = arith.constant 0 : index
    %c0_37 = arith.constant 0 : index
    %42 = vector.load %arg6[%c0_35, %c0_36, %c0_37] : memref<1x16x64xf32, #tpu.memory_space<vmem>>, vector<1x16x64xf32>
    %43 = vector.shape_cast %42 : vector<1x16x64xf32> to vector<16x64xf32>
    %44 = vector.shape_cast %41 : vector<16x64xf32> to vector<1x16x64xf32>
    tpu.vector_store %arg6[%c0_35, %c0_36, %c0_37], %44 {strides = array<i32>} : memref<1x16x64xf32, #tpu.memory_space<vmem>>, vector<1x16x64xf32>,
    return
  }
  func.func @transform_0(%arg0: i32) -> (i32, i32, i32) {
    %c0_i32 = arith.constant 0 : i32
    %c0_i32_0 = arith.constant 0 : i32
    %c0_i32_1 = arith.constant 0 : i32
    return %arg0, %c0_i32, %c0_i32_0 : i32, i32, i32
  }
  func.func @transform_1(%arg0: i32) -> (i32, i32, i32) {
    %c0_i32 = arith.constant 0 : i32
    %c0_i32_0 = arith.constant 0 : i32
    %c0_i32_1 = arith.constant 0 : i32
    %c0_i32_2 = arith.constant 0 : i32
    return %c0_i32, %c0_i32_0, %c0_i32_1 : i32, i32, i32
  }
  func.func @transform_2(%arg0: i32) -> (i32, i32) {
    %c0_i32 = arith.constant 0 : i32
    %c0_i32_0 = arith.constant 0 : i32
    %c0_i32_1 = arith.constant 0 : i32
    return %c0_i32, %c0_i32_0 : i32, i32
  }
  func.func @transform_3(%arg0: i32) -> (i32, i32) {
    %c0_i32 = arith.constant 0 : i32
    %c0_i32_0 = arith.constant 0 : i32
    %c0_i32_1 = arith.constant 0 : i32
    return %c0_i32, %c0_i32_0 : i32, i32
  }
  func.func @transform_4(%arg0: i32) -> (i32, i32) {
    %c0_i32 = arith.constant 0 : i32
    %c0_i32_0 = arith.constant 0 : i32
    %c0_i32_1 = arith.constant 0 : i32
    return %c0_i32, %c0_i32_0 : i32, i32
  }
  func.func @transform_5(%arg0: i32) -> (i32, i32, i32) {
    %c0_i32 = arith.constant 0 : i32
    %c0_i32_0 = arith.constant 0 : i32
    %c0_i32_1 = arith.constant 0 : i32
    return %arg0, %c0_i32, %c0_i32_0 : i32, i32, i32
  }
}

</mosaic_0001>

<bundles_post_ra>
// kernel: tpu_custom_call.1
= control target key start
LH: loop header
LB: loop body
LE: loop exit
PB: predicated region body
PF: predicated region fallthrough
CT: control target
= control target key end

     0   :  { %10 = vsyncpa [#allocation4], 0  ;;  %s1286_s0 = inlined_call_operand.vmem [shape: f32[2,16,64], index: 0, kind: input, shape index: {}]   ;;  %s1287_s1 = inlined_call_operand.vmem [shape: f32[3,32,16], index: 1, kind: input, shape index: {}]   ;;  %s1288_s2 = inlined_call_operand.vmem [shape: f32[32,1], index: 2, kind: input, shape index: {}]   ;;  %s1289_s3 = inlined_call_operand.vmem [shape: f32[16,16], index: 3, kind: input, shape index: {}]   ;;  %s1290_s4 = inlined_call_operand.vmem [shape: f32[16,1], index: 4, kind: input, shape index: {}]   ;;  %s1291_s5 = inlined_call_operand.hbm [shape: f32[2,16,64], index: 5, kind: output, shape index: {}]  }
   0x1   :  { %12 = vsyncpa [#allocation4 + $0x1], 0  ;;  %s1097_s18 = smov 0   ;;  %s1099_s19 = smov 0  }
   0x2   :  { %s1101_s20 = smov 0   ;;  %s1103_s21 = smov 0  }
   0x3 LB: > { %s1118_s22 = sadd.s32 4294967295, %s1058_s21   ;;  %s797_s23 = sadd.s32 4294967294, %s1058_s21   ;;  %s1058_s21 = sphi %s1103_s21, %s1297_s21   ;;  %s1054_s20 = sphi %s1101_s20, %s1296_s20   ;;  %s1050_s19 = sphi %s1099_s19, %s1295_s19   ;;  %s1046_s18 = sphi %s1097_s18, %s1294_s18  }
   0x4   : > { %s1122_s24 = sadd.s32 1, %s1058_s21   ;;  %s135_s25 = sadd.s32 1, %s1054_s20 }
   0x5   : > { %s132_s26 = ssub.s32 %s1058_s21, %s1122_s24  ;;  %p145_p0 = scmp.ne.s32.totalorder %s1054_s20, %s1050_s19 }
   0x6   : > { %p133_p1 = scmp.eq.s32.totalorder %s132_s26, 0  ;;  %p146_p2 = scmp.eq.s32.totalorder %s1118_s22, 1 }
   0x7   : > { %p151_p3 = scmp.ne.s32.totalorder %s1050_s19, %s1046_s18  ;;  %p152_p4 = scmp.eq.s32.totalorder %s797_s23, 1 }
   0x8   : > { %s1133_s27 = scalar_select %p133_p1, %s1054_s20, %s135_s25  }
   0x9   : > { %p1135_p5 = por %p146_p2, %p145_p0  ;;  %p1139_p6 = por %p152_p4, %p151_p3 }
   0xa   : > { %p800_p7 = scmp.ge.s32.totalorder %s1058_s21, 1  ;;  %p190_p8 = scmp.lt.s32.totalorder %s1058_s21, 3 }
   0xc   : > { %p191_p9 = pnand %p800_p7, %p190_p8 }
   0xd   : > { %p218_p10 = scmp.lt.s32.totalorder (!%p191_p9), %s1118_s22, 1  ;;  %vm224_vm0 = vcmask (!%p191_p9), 539648   ;;  %vm286_vm1 = vcmask (!%p191_p9), 130048   ;;  %v1060_v0 = vmov (!%p191_p9), 0.0   ;;  %v808_v1 = vld [vmem:[%s1287_s1 + $0x20] sm:$0xff] (!%p191_p9)  ;;  %vm230_vm2 = vcmask (!%p191_p9), 523264  }
   0xe   : > { %194 = sbr.rel (%p191_p9) target bundleno = 651 (0x28b), region = 40  ;;  %225 = vst.msk [vmem:[#allocation2 + $0x8] sm:$0xff] (!%p191_p9), %vm224_vm0, %v1060_v0  ;;  %227 = vst.msk [vmem:[#allocation2 + $0x18] sm:$0xff] (!%p191_p9), %vm224_vm0, %v1060_v0  ;;  %871 = vmatprep.mubr.msk.f32.mxu0 (!%p191_p9), %vm286_vm1, %v808_v1  ;;  %v265_v9 = vld [vmem:[%s1287_s1] sm:$0xff] (!%p191_p9)  ;;  %s1061_s14 = smov (!%p191_p9), 126   ;;  %v809_v11 = vld [vmem:[%s1287_s1 + $0x28] sm:$0xff] (!%p191_p9) }
   0xf   : > { %861 = vmatprep.mubr.msk.f32.mxu1 (!%p191_p9), %vm286_vm1, %v265_v9  ;;  %s1062_s15 = smov (!%p191_p9), 2   ;;  %v810_v12 = vld [vmem:[%s1287_s1 + $0x30] sm:$0xff] (!%p191_p9)  ;;  %v1063_v14 = vmov (!%p191_p9), 0   ;;  %v236_v15 = vld [vmem:[%s1288_s2 + $0x18] sm:$0xff] (!%p191_p9)  ;;  %v816_v17 = vld [vmem:[%s1287_s1 + $0x40] sm:$0xff] (!%p191_p9)  ;;  %vm281_vm3 = vcmask (!%p191_p9), 15360  }
  0x10   : > { %v235_v13 = vld [vmem:[%s1288_s2 + $0x10] sm:$0xff] (!%p191_p9)  ;;  %982 = vset.pattern.permute.xlu1 (!%p191_p9), %v1063_v14  ;;  %v811_v16 = vld [vmem:[%s1287_s1 + $0x38] sm:$0xff] (!%p191_p9)  ;;  %v233_v18 = vld [vmem:[%s1288_s2] sm:$0xff] (!%p191_p9)  ;;  %983 = vset.pattern.permute.xlu0 (!%p191_p9), %v1063_v14  ;;  %s215_s26 = sand.u32 (!%p191_p9), 1, %s1050_s19   ;;  %s1064_s13 = smov (!%p191_p9), [#allocation3]  }
  0x11   : > { %v259_v19 = vld [vmem:[%s1290_s4] sm:$0xff] (!%p191_p9)  ;;  %v234_v20 = vld [vmem:[%s1288_s2 + $0x8] sm:$0xff] (!%p191_p9)  ;;  %v818_v35 = vld [vmem:[%s1287_s1 + $0x50] sm:$0xff] (!%p191_p9)  ;;  %s801_s30 = sshll.u32 (!%p191_p9), %s215_s26, 4 }
  0x12   : > { %v260_v21 = vld [vmem:[%s1290_s4 + $0x8] sm:$0xff] (!%p191_p9)  ;;  %v819_v37 = vld [vmem:[%s1287_s1 + $0x58] sm:$0xff] (!%p191_p9)  ;;  %v267_v39 = vld [vmem:[%s1287_s1 + $0x10] sm:$0xff] (!%p191_p9)  ;;  %s217_s6 = scalar_lea.vmem (!%p191_p9), [#allocation3], %s801_s30 }
  0x13   : > { %v817_v32 = vld [vmem:[%s1287_s1 + $0x48] sm:$0xff] (!%p191_p9)  ;;  %v268_v40 = vld [vmem:[%s1287_s1 + $0x18] sm:$0xff] (!%p191_p9)  ;;  %v257_v41 = vld [vmem:[%s1289_s3] sm:$0xff] (!%p191_p9) }
  0x14   : > { %v266_v38 = vld [vmem:[%s1287_s1 + $0x8] sm:$0xff] (!%p191_p9) }
  0x15   : > { %s219_s7 = scalar_select %p218_p10, %s1118_s22, 1 }
  0x17   : > { %s833_s8 = sshll.u32 %s219_s7, 4  ;;  %s735_s7 = sshll.u32 %s217_s6, 4  ;;  %s1241_s7 = int_to_ptr.vmem [resolvable:$true] %s735_s7 }
  0x18   : > { %s222_s11 = scalar_lea.vmem %s1286_s0, %s833_s8  ;;  %s834_s8 = sshll.u32 %s1118_s22, 8 }
  0x19   : > { %v1154_v2 = vld [vmem:[%s222_s11] sm:$0xff]  ;;  %v1156_v3 = vld [vmem:[%s222_s11 + $0x8] sm:$0xff]  ;;  %s1239_s11 = scalar_lea.hbm %s1291_s5, %s834_s8  ;;  %s1245_s22 = scalar_lea.sflag [#allocation4], %s215_s26 }
  0x1a   : > { %231 = vst.msk [vmem:[#allocation2 + $0x8] sm:$0xff] %vm230_vm2, %v1154_v2  ;;  %232 = vst.msk [vmem:[#allocation2 + $0x18] sm:$0xff] %vm230_vm2, %v1156_v3  ;;  %s996_s12 = scalar_lea.vmem %s1241_s7, 256 }
  0x1b   : > { %p997_p11 = scmp.ne.s32.totalorder %s1241_s7, %s996_s12 }
  0x1d   : > { %p998_p12 = pnand %p997_p11, %p1135_p5 }
  0x1f   : > { %p999_p13 = pneg %p998_p12 }
  0x21   : > { %v262_v4 = vld [vmem:[#allocation2 + $0x8] sm:$0xff]  ;;  %v264_v5 = vld [vmem:[#allocation2 + $0x18] sm:$0xff] }
  0x22   : > { %v977_v6 = vpack.i.bf16 %v264_v5, %v262_v4  ;;  %v967_v7 = vpack.i.bf16 %v262_v4, %v1060_v0  ;;  %v898_v8 = vpack.c.bf16 %v264_v5, %v262_v4  ;;  %v972_v10 = vpack.i.bf16 %v264_v5, %v1060_v0 }
  0x24   : > { %978 = vrot.lane.b32.xlu1 %v977_v6, %s1061_s14  ;;  %968 = vrot.lane.b32.xlu0 %v967_v7, %s1062_s15  ;;  %s1000_s14 = sshll.u32 %s1064_s13, 4  ;;  %s1001_s14 = int_to_ptr.vmem [resolvable:$false] %s1000_s14 }
  0x25   : > { %899 = vmatprep.subr.bf16.mxu0 %v898_v8  ;;  %p1003_p0 = scmp.lt.s32.totalorder %s1241_s7, %s1001_s14 }
  0x26   : > { %901 = vmatpush3.bf16.msra.mxu0 %v898_v8 }
  0x28   : > { %973 = vrot.lane.b32.xlu0 %v972_v10, %s1062_s15  ;;  %249 = vperm.xlu1 %982, %v235_v13   ;;  %v258_v13 = vld [vmem:[%s1289_s3 + $0x8] sm:$0xff]  ;;  %s1002_s15 = scalar_lea.vmem %s1001_s14, 512 }
  0x29   : > { %872 = vmatmul.mubr.msk.f32.vlgmr.msra.gmra.mrb[0].mxu0 %vm286_vm1, %v809_v11  ;;  %p1004_p1 = scmp.lt.s32.totalorder %s1002_s15, %s996_s12 }
  0x2a   : > { %874 = vmatprep.mubr.msk.f32.mxu0 %vm286_vm1, %v810_v12 }
  0x2b   : > { %p1005_p2 = por %p1004_p1, %p1003_p0 }
  0x2c   : > { %254 = vperm.xlu0 %983, %v236_v15   ;;  %239 = vperm.xlu1 %982, %v233_v18  }
  0x2d   : > { %875 = vmatmul.mubr.msk.f32.gmra.mrb[2].mxu0 %vm286_vm1, %v811_v16  ;;  %p1006_p3 = pnand %p1005_p2, %p999_p13 }
  0x2e   : > { %881 = vmatprep.mubr.msk.f32.mxu0 %vm286_vm1, %v816_v17 }
  0x30   : > { %709 = vperm.xlu0 %983, %v259_v19   ;;  %244 = vperm.xlu1 %982, %v234_v20  }
  0x34   : > { %714 = vperm.xlu1 %982, %v260_v21  }
  0x96   : > { %v979_v22 = vpop.permute.xlu1 %978  ;;  %v969_v23 = vpop.permute.xlu0 %968 }
  0x97   : > { %v981_v24 = vunpack.i.h.bf16 %v979_v22  ;;  %v980_v25 = vunpack.i.l.bf16 %v979_v22  ;;  %v971_v27 = vunpack.i.h.bf16 %v969_v23  ;;  %v970_v28 = vunpack.i.l.bf16 %v969_v23 }
  0x99   : > { %v902_v26 = vpack.c.bf16 %v981_v24, %v980_v25  ;;  %v282_v33 = vsel %vm281_vm3, %v970_v28, %v971_v27 }
  0x9a   : > { %v974_v29 = vpop.permute.xlu0 %973 }
  0x9b   : > { %v976_v30 = vunpack.i.h.bf16 %v974_v29  ;;  %v975_v31 = vunpack.i.l.bf16 %v974_v29  ;;  %903 = vmatprep.subr.bf16.mxu0 %v902_v26 }
  0x9c   : > { %905 = vmatpush3.bf16.msra.mxu0 %v902_v26 }
  0x9d   : > { %v283_v34 = vsel %vm281_vm3, %v975_v31, %v976_v30 }
  0x9e   : > { %v894_v36 = vpack.c.bf16 %v283_v34, %v282_v33 }
  0x9f   : > { %882 = vmatmul.mubr.msk.f32.vlgmr.msra.gmra.mrb[0].mxu0 %vm286_vm1, %v817_v32 }
  0xa0   : > { %895 = vmatprep.subr.bf16.mxu1 %v894_v36  ;;  %884 = vmatprep.mubr.msk.f32.mxu0 %vm286_vm1, %v818_v35 }
  0xa1   : > { %897 = vmatpush3.bf16.msra.mxu1 %v894_v36 }
  0xa3   : > { %885 = vmatmul.mubr.msk.f32.gmra.mrb[2].mxu0 %vm286_vm1, %v819_v37 }
  0xa4   : > { %862 = vmatmul.mubr.msk.f32.vlgmr.msra.gmra.mrb[0].mxu1 %vm286_vm1, %v266_v38 }
  0xa5   : > { %864 = vmatprep.mubr.msk.f32.mxu1 %vm286_vm1, %v267_v39 }
  0xa7   : > { %v250_v42 = vpop.permute.xlu1 %249 }
  0xa8   : > { %865 = vmatmul.mubr.msk.f32.gmra.mrb[2].mxu1 %vm286_vm1, %v268_v40 }
  0xa9   : > { %891 = vmatprep.mubr.msk.f32.mxu1 %vm286_vm1, %v257_v41 }
  0xab   : > { %v240_v43 = vpop.permute.xlu1 %239  ;;  %v255_v54 = vpop.permute.xlu0 %254 }
  0xaf   : > { %v245_v46 = vpop.permute.xlu1 %244  ;;  %v710_v19 = vpop.permute.xlu0 %709 }
  0xb3   : > { %v715_v17 = vpop.permute.xlu1 %714 }
 0x172   : > { %v883_v44 = vpop.f32.mrb[0].mxu0 }
 0x173   : > { %v583_v45 = vpop.f32.mrb[1].mxu0 }
 0x176   : > { %v886_v47 = vpop.f32.mrb[2].mxu0 }
 0x177   : > { %v863_v48 = vpop.f32.mrb[0].mxu1  ;;  %v593_v49 = vpop.f32.mrb[3].mxu0 }
 0x178   : > { %v385_v50 = vadd.f32 %v863_v48, %v245_v46  ;;  %v365_v51 = vpop.f32.mrb[1].mxu1 }
 0x179   : > { %v384_v52 = vadd.f32 %v365_v51, %v240_v43 }
 0x17a   : > { %v911_v53 = vadd.f32 %v883_v44, %v385_v50 }
 0x17b   : > { %v913_v55 = vadd.f32 %v583_v45, %v384_v52  ;;  %v866_v56 = vpop.f32.mrb[2].mxu1 }
 0x17c   : > { %v387_v57 = vadd.f32 %v866_v56, %v255_v54  ;;  %v375_v58 = vpop.f32.mrb[3].mxu1 }
 0x17d   : > { %v386_v59 = vadd.f32 %v375_v58, %v250_v42 }
 0x17e   : > { %v915_v60 = vadd.f32 %v886_v47, %v387_v57 }
 0x17f   : > { %v917_v61 = vadd.f32 %v593_v49, %v386_v59 }
 0x180   : > { %v825_v62 = vmul.f32 -1.442695, %v915_v60 }
 0x181   : > { %v824_v63 = vmul.f32 -1.442695, %v917_v61 }
 0x182   : > { %984 = vpow2.f32 %v825_v62 }
 0x183   : > { %986 = vpow2.f32 %v824_v63 }
 0x184   : > { %988 = vtanh.f32 %v911_v53 }
 0x185   : > { %990 = vtanh.f32 %v913_v55 }
 0x18c   : > { %v985_v0 = vpop.eup %984 }
 0x18d   : > { %v987_v1 = vpop.eup %986  ;;  %v615_v4 = vadd.f32 1.0, %v985_v0 }
 0x18e   : > { %v614_v5 = vadd.f32 1.0, %v987_v1  ;;  %v989_v6 = vpop.eup %988 }
 0x18f   : > { %992 = vrcp.f32 %v615_v4  ;;  %v991_v7 = vpop.eup %990 }
 0x190   : > { %994 = vrcp.f32 %v614_v5 }
 0x199   : > { %v993_v8 = vpop.eup %992 }
 0x19a   : > { %v995_v9 = vpop.eup %994  ;;  %v621_v10 = vmul.f32 %v993_v8, %v989_v6 }
 0x19b   : > { %v620_v11 = vmul.f32 %v995_v9, %v991_v7 }
 0x19d   : > { %v906_v12 = vpack.c.bf16 %v621_v10, %v620_v11 }
 0x19f   : > { %907 = vmatprep.subr.bf16.mxu1 %v906_v12 }
 0x1a0   : > { %909 = vmatpush3.bf16.msra.mxu1 %v906_v12 }
 0x1a3   : > { %892 = vmatmul.mubr.msk.f32.vlgmr.msra.gmra.mrb[4].mxu1 %vm286_vm1, %v258_v13 }
 0x276   : > { %v893_v14 = vpop.f32.mrb[4].mxu1 }
 0x277   : > { %v706_v15 = vadd.f32 %v893_v14, %v1156_v3  ;;  %v694_v16 = vpop.f32.mrb[5].mxu1 }
 0x278   : > { %v705_v18 = vadd.f32 %v694_v16, %v1154_v2 }
 0x279   : > { %v718_v20 = vadd.f32 %v715_v17, %v706_v15 }
 0x27a   : > { %v717_v21 = vadd.f32 %v710_v19, %v705_v18 }
 0x27b   : > { %720 = vst.msk [vmem:[%s217_s6 + $0x8] sm:$0xff] %vm230_vm2, %v718_v20 }
 0x27c   : > { %719 = vst.msk [vmem:[%s217_s6] sm:$0xff] %vm230_vm2, %v717_v21 }
 0x27d   : > { %1009 = shalt.err (!%p1006_p3)
}
 0x27e   : > { %s1010_s16 = scalar_lea.hbm %s1239_s11, 256  ;;  %s1014_s25 = scalar_lea.hbm %s1291_s5, 512 }
 0x27f   : > { %p1011_p4 = scmp.ne.s32.totalorder %s1239_s11, %s1010_s16  ;;  %p1015_p9 = scmp.lt.u32.totalorder %s1239_s11, %s1291_s5 }
 0x280   : > { %p1016_p10 = scmp.lt.u32.totalorder %s1014_s25, %s1010_s16  ;;  %p1018_p12 = scmp.lt.u32.totalorder %s1010_s16, %s1239_s11 }
 0x281   : > { %p1012_p7 = pnand %p1011_p4, %p1135_p5 }
 0x282   : > { %p1017_p11 = por %p1016_p10, %p1015_p9 }
 0x283   : > { %p1013_p8 = pneg %p1012_p7 }
 0x284   : > { %p1019_p13 = por %p1018_p12, %p1017_p11 }
 0x286   : > { %p1020_p0 = pnand %p1019_p13, %p1013_p8 }
 0x288   : > { %1023 = shalt.err (!%p1020_p0)
}
 0x289   : > { %s1065_s6 = smov 128   ;;  %s1066_s8 = smov 8  }
 0x28a   : > { %922 = dma.vmem_to_hbm [thread:$0]  (%p1135_p5), %s1241_s7, 256, %s1239_s11, %s1245_s22, %s1065_s6, %s1065_s6, %s1066_s8  }
 0x28b PF: > { %p928_p1 = scmp.ge.s32.totalorder %s1058_s21, 2  ;;  %s750_s9 = sand.u32 1, %s1046_s18  }
 0x28c   : > { %s751_s10 = scalar_lea.sflag [#allocation4], %s750_s9 }
 0x28d   : > { %p925_p2 = pnand %p928_p1, %p1139_p6 }
 0x28f   : > { %1041 = dma.done.wait (!%p925_p2), %s751_s10, 256  }
 0x290   : > { %1043 = vsyncadd (!%p925_p2), %s751_s10, 4294967040  ;;  %p15_p3 = scmp.ge.s32.totalorder %s1122_s24, 4   ;;  %s1294_s18 = smov %s1050_s19 }
 0x291   : > { %s1295_s19 = smov %s1054_s20  ;;  %s1296_s20 = smov %s1133_s27 }
 0x292   : > { %s1297_s21 = smov %s1122_s24  ;;  %17 = sbr.rel (!%p15_p3) target bundleno = 3 (0x3), region = 77 }
 0x299   :  { %756 = vsyncpa [#allocation4], 1 }
 0x29a   :  { %758 = vsyncpa [#allocation4 + $0x1], 1 }

</bundles_post_ra>
